<compile_context>
chip_gen: v7x
topology: tpu7x:2x2x1
jax: 0.10.0
libtpu: 0.0.40
codegen_flags: <defaults>
</compile_context>

<pallas_src>
import jax
import jax.numpy as jnp
from jax.experimental import pallas as pl
from jax.experimental.pallas import tpu as pltpu

LATENT_DIM = 20
HIDDEN_DIM = 400
OUT_DIM = 784


def _round_up(x, m):
    return (x + m - 1) // m * m


def decoder_kernel(z_ref, w3_ref, b3_ref, w4_ref, b4_ref, out_ref):
    # fc3: bf16 MXU matmul, f32 accumulate; bias + relu in f32.
    h = jnp.dot(z_ref[...], w3_ref[...], preferred_element_type=jnp.float32)
    h = jnp.maximum(h + b3_ref[...], 0.0)
    # fc4: bf16 MXU matmul, f32 accumulate; bias in f32.
    logits = jnp.dot(h.astype(jnp.bfloat16), w4_ref[...],
                     preferred_element_type=jnp.float32)
    logits = logits + b4_ref[...]
    # sigmoid(x) = 1 / (1 + exp(-x)); exp + reciprocal both on the EUP slot.
    sig = pl.reciprocal(1.0 + jnp.exp(-logits), approx=True)
    out_ref[...] = sig.astype(out_ref.dtype)


def decoder_forward(z, w3, b3, w4, b4, *, max_block_b=1024,
                    out_dtype=jnp.float32):
    B, latent = z.shape
    hidden = w3.shape[1]
    out_dim = w4.shape[1]

    # Hidden dim padded to a multiple of 128 (internal only, exact zeros).
    hid_p = _round_up(hidden, 128)

    # Batch tiling: pad B to a multiple of 8 first, then split into n_steps
    # tiles.  Force >= 2 grid steps when B > 8 so the "parallel" batch axis
    # can shard across both v7x TensorCores (no-op on single-TC v5e/v6e).
    b8 = _round_up(B, 8)
    n_steps = pl.cdiv(b8, max_block_b)
    if b8 > 8:
        n_steps = max(n_steps, 2)
    tb = _round_up(pl.cdiv(b8, n_steps), 8)
    b_p = n_steps * tb

    # Inputs: bf16 MXU operands prepared once in the wrapper.
    z_p = z.astype(jnp.bfloat16)
    if b_p != B:
        z_p = jnp.pad(z_p, ((0, b_p - B), (0, 0)))
    w3_p = jnp.pad(w3, ((0, 0), (0, hid_p - hidden))).astype(jnp.bfloat16)
    b3_p = jnp.pad(jnp.reshape(b3, (1, -1)), ((0, 0), (0, hid_p - hidden)))
    w4_p = jnp.pad(w4, ((0, hid_p - hidden), (0, 0))).astype(jnp.bfloat16)
    b4_p = jnp.reshape(b4, (1, -1))

    grid = (n_steps,)

    cost = pl.CostEstimate(
        flops=2 * b_p * (latent * hid_p + hid_p * out_dim),
        transcendentals=2 * b_p * out_dim,           # exp + reciprocal
        bytes_accessed=(z_p.size * 2 + w3_p.size * 2 + w4_p.size * 2
                        + b3_p.size * 4 + b4_p.size * 4
                        + b_p * out_dim * jnp.dtype(out_dtype).itemsize),
    )

    out = pl.pallas_call(
        decoder_kernel,
        out_shape=jax.ShapeDtypeStruct((b_p, out_dim), out_dtype),
        grid_spec=pl.GridSpec(
            grid=grid,
            in_specs=[
                pl.BlockSpec((tb, latent), lambda i: (i, 0)),       # z: batch-tiled
                pl.BlockSpec((latent, hid_p), lambda i: (0, 0)),    # w3: resident
                pl.BlockSpec((1, hid_p), lambda i: (0, 0)),         # b3: resident
                pl.BlockSpec((hid_p, out_dim), lambda i: (0, 0)),   # w4: resident
                pl.BlockSpec((1, out_dim), lambda i: (0, 0)),       # b4: resident
            ],
            out_specs=pl.BlockSpec((tb, out_dim), lambda i: (i, 0)),
        ),
        compiler_params=pltpu.CompilerParams(
            dimension_semantics=("parallel",),
        ),
        cost_estimate=cost,
    )(z_p, w3_p, b3_p, w4_p, b4_p)

    if b_p != B:
        out = out[:B]          # row slice only; columns are already exact (784)
    return out


def init_params(key):
    # Mirrors torch.nn.Linear default init: U(-1/sqrt(fan_in), 1/sqrt(fan_in)).
    k1, k2, k3, k4 = jax.random.split(key, 4)
    bound3 = 1.0 / jnp.sqrt(LATENT_DIM)
    bound4 = 1.0 / jnp.sqrt(HIDDEN_DIM)
    w3 = jax.random.uniform(k1, (LATENT_DIM, HIDDEN_DIM), jnp.float32,
                            -bound3, bound3)
    b3 = jax.random.uniform(k2, (HIDDEN_DIM,), jnp.float32, -bound3, bound3)
    w4 = jax.random.uniform(k3, (HIDDEN_DIM, OUT_DIM), jnp.float32,
                            -bound4, bound4)
    b4 = jax.random.uniform(k4, (OUT_DIM,), jnp.float32, -bound4, bound4)
    return w3, b3, w4, b4


def reference_forward(z, w3, b3, w4, b4):
    # Matches the kernel's matmul numerics (bf16 operands, f32 accumulate);
    # sigmoid in full f32 (kernel uses an EUP approx reciprocal -> small delta).
    h = jnp.dot(z.astype(jnp.bfloat16), w3.astype(jnp.bfloat16),
                preferred_element_type=jnp.float32) + b3[None, :]
    h = jnp.maximum(h, 0.0)
    logits = jnp.dot(h.astype(jnp.bfloat16), w4.astype(jnp.bfloat16),
                     preferred_element_type=jnp.float32) + b4[None, :]
    return jax.nn.sigmoid(logits)


if __name__ == "__main__":
    key = jax.random.PRNGKey(0)
    kz, kp = jax.random.split(key)
    batch = 8
    z = jax.random.normal(kz, (batch, LATENT_DIM), jnp.float32)
    w3, b3, w4, b4 = init_params(kp)

    out = jax.block_until_ready(decoder_forward(z, w3, b3, w4, b4))
    ref = reference_forward(z, w3, b3, w4, b4)

    assert out.shape == (batch, OUT_DIM)
    max_err = float(jnp.max(jnp.abs(out - ref)))
    # Tolerance absorbs the EUP approximate-reciprocal in the kernel's sigmoid.
    assert jnp.allclose(out, ref, atol=2e-3, rtol=2e-3), max_err
    print("KERNEL_OK")
</pallas_src>

<mosaic_0001>
module attributes {stable_mosaic.version = 11 : i64} {
  func.func @decoder_kernel(%arg0: i32, %arg1: memref<8x20xbf16, #tpu.memory_space<vmem>>, %arg2: memref<20x512xbf16, #tpu.memory_space<vmem>>, %arg3: memref<1x512xf32, #tpu.memory_space<vmem>>, %arg4: memref<512x784xbf16, #tpu.memory_space<vmem>>, %arg5: memref<1x784xf32, #tpu.memory_space<vmem>>, %arg6: memref<8x784xf32, #tpu.memory_space<vmem>>) attributes {dimension_semantics = [#tpu.dimension_semantics<parallel>], iteration_bounds = array<i64: 1>, scalar_prefetch = 0 : i64, scratch_operands = 0 : i64, tpu.core_type = #tpu.core_type<tc>, window_params = [{transform_indices = @transform_0, window_bounds = array<i64: 8, 20>}, {pipeline_mode = #tpu.pipeline_mode<synchronous>, transform_indices = @transform_1, window_bounds = array<i64: 20, 512>}, {pipeline_mode = #tpu.pipeline_mode<synchronous>, transform_indices = @transform_2, window_bounds = array<i64: 1, 512>}, {pipeline_mode = #tpu.pipeline_mode<synchronous>, transform_indices = @transform_3, window_bounds = array<i64: 512, 784>}, {pipeline_mode = #tpu.pipeline_mode<synchronous>, transform_indices = @transform_4, window_bounds = array<i64: 1, 784>}, {transform_indices = @transform_5, window_bounds = array<i64: 8, 784>}]} {
    %c0 = arith.constant 0 : index
    %c0_0 = arith.constant 0 : index
    %0 = vector.load %arg1[%c0, %c0_0] : memref<8x20xbf16, #tpu.memory_space<vmem>>, vector<8x20xbf16>
    %c0_1 = arith.constant 0 : index
    %c0_2 = arith.constant 0 : index
    %1 = vector.load %arg2[%c0_1, %c0_2] : memref<20x512xbf16, #tpu.memory_space<vmem>>, vector<20x512xbf16>
    %cst = arith.constant dense<0.000000e+00> : vector<8x512xf32>
    %2 = tpu.matmul %0, %1, %cst {dimension_numbers = #tpu.dot_dimension_numbers<[1], [0], [0], [1], [0, 0, 1, 1], [], []>} : vector<8x20xbf16>, vector<20x512xbf16>, vector<8x512xf32> -> vector<8x512xf32>
    %c0_3 = arith.constant 0 : index
    %c0_4 = arith.constant 0 : index
    %3 = vector.load %arg3[%c0_3, %c0_4] : memref<1x512xf32, #tpu.memory_space<vmem>>, vector<1x512xf32>
    %4 = vector.broadcast %3 : vector<1x512xf32> to vector<8x512xf32>
    %5 = arith.addf %2, %4 : vector<8x512xf32>
    %cst_5 = arith.constant 0.000000e+00 : f32
    %6 = vector.broadcast %cst_5 : f32 to vector<8x512xf32>
    %7 = arith.maximumf %5, %6 : vector<8x512xf32>
    %8 = arith.truncf %7 : vector<8x512xf32> to vector<8x512xbf16>
    %c0_6 = arith.constant 0 : index
    %c0_7 = arith.constant 0 : index
    %9 = vector.load %arg4[%c0_6, %c0_7] : memref<512x784xbf16, #tpu.memory_space<vmem>>, vector<512x784xbf16>
    %cst_8 = arith.constant dense<0.000000e+00> : vector<8x784xf32>
    %10 = tpu.matmul %8, %9, %cst_8 {dimension_numbers = #tpu.dot_dimension_numbers<[1], [0], [0], [1], [0, 0, 1, 1], [], []>} : vector<8x512xbf16>, vector<512x784xbf16>, vector<8x784xf32> -> vector<8x784xf32>
    %c0_9 = arith.constant 0 : index
    %c0_10 = arith.constant 0 : index
    %11 = vector.load %arg5[%c0_9, %c0_10] : memref<1x784xf32, #tpu.memory_space<vmem>>, vector<1x784xf32>
    %12 = vector.broadcast %11 : vector<1x784xf32> to vector<8x784xf32>
    %13 = arith.addf %10, %12 : vector<8x784xf32>
    %cst_11 = arith.constant 0.000000e+00 : f32
    %14 = vector.broadcast %cst_11 : f32 to vector<8x784xf32>
    %15 = arith.subf %14, %13 : vector<8x784xf32>
    %16 = math.exp %15 : vector<8x784xf32>
    %cst_12 = arith.constant 1.000000e+00 : f32
    %17 = vector.broadcast %cst_12 : f32 to vector<8x784xf32>
    %18 = arith.addf %17, %16 : vector<8x784xf32>
    %19 = tpu.reciprocal %18 {approx = true} : vector<8x784xf32> -> vector<8x784xf32>
    %c0_13 = arith.constant 0 : index
    %c0_14 = arith.constant 0 : index
    %20 = vector.load %arg6[%c0_13, %c0_14] : memref<8x784xf32, #tpu.memory_space<vmem>>, vector<8x784xf32>
    tpu.vector_store %arg6[%c0_13, %c0_14], %19 {strides = array<i32>} : memref<8x784xf32, #tpu.memory_space<vmem>>, vector<8x784xf32>,
    return
  }
  func.func @transform_0(%arg0: i32) -> (i32, i32) {
    %c0_i32 = arith.constant 0 : i32
    %c0_i32_0 = arith.constant 0 : i32
    return %arg0, %c0_i32 : i32, i32
  }
  func.func @transform_1(%arg0: i32) -> (i32, i32) {
    %c0_i32 = arith.constant 0 : i32
    %c0_i32_0 = arith.constant 0 : i32
    %c0_i32_1 = arith.constant 0 : i32
    return %c0_i32, %c0_i32_0 : i32, i32
  }
  func.func @transform_2(%arg0: i32) -> (i32, i32) {
    %c0_i32 = arith.constant 0 : i32
    %c0_i32_0 = arith.constant 0 : i32
    %c0_i32_1 = arith.constant 0 : i32
    return %c0_i32, %c0_i32_0 : i32, i32
  }
  func.func @transform_3(%arg0: i32) -> (i32, i32) {
    %c0_i32 = arith.constant 0 : i32
    %c0_i32_0 = arith.constant 0 : i32
    %c0_i32_1 = arith.constant 0 : i32
    return %c0_i32, %c0_i32_0 : i32, i32
  }
  func.func @transform_4(%arg0: i32) -> (i32, i32) {
    %c0_i32 = arith.constant 0 : i32
    %c0_i32_0 = arith.constant 0 : i32
    %c0_i32_1 = arith.constant 0 : i32
    return %c0_i32, %c0_i32_0 : i32, i32
  }
  func.func @transform_5(%arg0: i32) -> (i32, i32) {
    %c0_i32 = arith.constant 0 : i32
    %c0_i32_0 = arith.constant 0 : i32
    return %arg0, %c0_i32 : i32, i32
  }
}

</mosaic_0001>

<bundles_post_ra>
// kernel: tpu_custom_call.1
= control target key start
LH: loop header
LB: loop body
LE: loop exit
PB: predicated region body
PF: predicated region fallthrough
CT: control target
= control target key end

     0   :  { %vm85_vm0 = vcmask 1041408   ;;  %v2698_v3 = vmov 0   ;;  %vm81_vm1 = vcmask 162816   ;;  %s3514_s0 = inlined_call_operand.vmem [shape: bf16[8,20], index: 0, kind: input, shape index: {}]   ;;  %s3515_s1 = inlined_call_operand.vmem [shape: bf16[20,512], index: 1, kind: input, shape index: {}]   ;;  %s3516_s2 = inlined_call_operand.vmem [shape: f32[1,512], index: 2, kind: input, shape index: {}]   ;;  %s3517_s3 = inlined_call_operand.vmem [shape: bf16[512,784], index: 3, kind: input, shape index: {}]   ;;  %s3518_s4 = inlined_call_operand.vmem [shape: f32[1,784], index: 4, kind: input, shape index: {}]   ;;  %s3519_s5 = inlined_call_operand.hbm [shape: f32[8,784], index: 5, kind: output, shape index: {}]  }
   0x1   :  { %v2316_v0 = vld [vmem:[%s3515_s1 + $0x4] ss:$16 sps:$4 sm:$0xff]   ;;  %v2318_v1 = vld [vmem:[%s3515_s1] ss:$16 sps:$4 sm:$0xff]   ;;  %130 = vmatprep.mubr.bf16.mxu1 %v2698_v3  ;;  %v2323_v6 = vld [vmem:[%s3515_s1 + $0xc] ss:$16 sps:$4 sm:$0xff]  }
   0x2   :  { %v27_v2 = vld [vmem:[%s3515_s1 + $0x20] sm:$0x33]  ;;  %98 = vmatprep.subr.bf16.mxu1 %v2316_v0  ;;  %v2321_v10 = vld [vmem:[%s3515_s1 + $0x8] ss:$16 sps:$4 sm:$0xff]   ;;  %v2338_v17 = vld [vmem:[%s3517_s3 + $0x74] ss:$28 sps:$4 sm:$0xff]  }
   0x3   :  { %v2021_v4 = vcombine.high %v27_v2, %v27_v2  ;;  %v2020_v5 = vcombine.low %v27_v2, %v27_v2  ;;  %99 = vmatpush1.bf16.msra.mxu1 %v2318_v1  ;;  %v2326_v8 = vld [vmem:[%s3517_s3 + $0x4] ss:$28 sps:$4 sm:$0xff]   ;;  %v28_v11 = vld [vmem:[%s3515_s1 + $0x28] sm:$0x33]  ;;  %v2332_v13 = vld [vmem:[%s3517_s3 + $0x3c] ss:$28 sps:$4 sm:$0xff]  }
   0x4   :  { %v22_v9 = vld [vmem:[%s3514_s0] sm:$0xf]  ;;  %1633 = vmatprep.subr.bf16.mxu0 %v2326_v8  ;;  %v2023_v14 = vcombine.high %v28_v11, %v28_v11  ;;  %v2022_v15 = vcombine.low %v28_v11, %v28_v11  ;;  %v2337_v16 = vld [vmem:[%s3517_s3 + $0x38] ss:$28 sps:$4 sm:$0xff]   ;;  %v2330_v18 = vld [vmem:[%s3517_s3 + $0xc] ss:$28 sps:$4 sm:$0xff]  }
   0x5   :  { %2024 = vmatprep.subr.msk.bf16.mxu1 %vm85_vm0, %v2021_v4  ;;  %v87_v7 = vsel %vm85_vm0, %v2020_v5, 0  ;;  %v2331_v12 = vld [vmem:[%s3517_s3] ss:$28 sps:$4 sm:$0xff]   ;;  %v2343_v20 = vld [vmem:[%s3517_s3 + $0x70] ss:$28 sps:$4 sm:$0xff]  }
   0x6   :  { %1634 = vmatpush1.bf16.msra.mxu0 %v2331_v12  ;;  %v93_v19 = vsel %vm85_vm0, %v2022_v15, 0  ;;  %v2344_v21 = vld [vmem:[%s3517_s3 + $0xac] ss:$28 sps:$4 sm:$0xff]   ;;  %v2336_v23 = vld [vmem:[%s3517_s3 + $0x44] ss:$28 sps:$4 sm:$0xff]  }
   0x7   :  { %101 = vmatpush1.bf16.msra.mxu1 %v87_v7  ;;  %1635 = vmatprep.subr.bf16.mxu0 %v2332_v13  ;;  %v2328_v22 = vld [vmem:[%s3517_s3 + $0x8] ss:$28 sps:$4 sm:$0xff]   ;;  %v2334_v26 = vld [vmem:[%s3517_s3 + $0x40] ss:$28 sps:$4 sm:$0xff]   ;;  %v2340_v30 = vld [vmem:[%s3517_s3 + $0x78] ss:$28 sps:$4 sm:$0xff]  }
   0x8   :  { %139 = vmatprep.subr.bf16.mxu1 %v2323_v6  ;;  %v2349_v24 = vld [vmem:[%s3517_s3 + $0xa8] ss:$28 sps:$4 sm:$0xff]   ;;  %v2342_v27 = vld [vmem:[%s3517_s3 + $0x7c] ss:$28 sps:$4 sm:$0xff]   ;;  %v2348_v31 = vld [vmem:[%s3517_s3 + $0xb4] ss:$28 sps:$4 sm:$0xff]  }
   0x9   :  { %v2350_v25 = vld [vmem:[%s3517_s3 + $0xe4] ss:$28 sps:$4 sm:$0xff]   ;;  %v2356_v29 = vld [vmem:[%s3517_s3 + $0x11c] ss:$28 sps:$4 sm:$0xff]   ;;  %v2362_v33 = vld [vmem:[%s3517_s3 + $0x154] ss:$28 sps:$4 sm:$0xff]  }
   0xa   :  { %2025 = vmatmul.mubr.msk.bf16.vlgmr.msra.gmra.mrb[0].mxu1 %vm81_vm1, %v22_v9  ;;  %1636 = vmatpush1.bf16.msra.mxu0 %v2337_v16  ;;  %v2355_v28 = vld [vmem:[%s3517_s3 + $0xe0] ss:$28 sps:$4 sm:$0xff]   ;;  %v2361_v32 = vld [vmem:[%s3517_s3 + $0x118] ss:$28 sps:$4 sm:$0xff]   ;;  %v2346_v34 = vld [vmem:[%s3517_s3 + $0xb0] ss:$28 sps:$4 sm:$0xff]  }
   0xb   :  { %140 = vmatpush1.bf16.msra.mxu1 %v2321_v10  ;;  %171 = vmatprep.mubr.bf16.mxu1 %v2698_v3  ;;  %v2354_v35 = vld [vmem:[%s3517_s3 + $0xec] ss:$28 sps:$4 sm:$0xff]   ;;  %v2360_v39 = vld [vmem:[%s3517_s3 + $0x124] ss:$28 sps:$4 sm:$0xff]   ;;  %v2366_v43 = vld [vmem:[%s3517_s3 + $0x15c] ss:$28 sps:$4 sm:$0xff]  }
   0xc   :  { %2026 = vmatprep.subr.msk.bf16.mxu1 %vm85_vm0, %v2023_v14  ;;  %1637 = vmatprep.subr.bf16.mxu0 %v2338_v17  ;;  %v2367_v36 = vld [vmem:[%s3517_s3 + $0x150] ss:$28 sps:$4 sm:$0xff]   ;;  %v2352_v38 = vld [vmem:[%s3517_s3 + $0xe8] ss:$28 sps:$4 sm:$0xff]   ;;  %v2358_v42 = vld [vmem:[%s3517_s3 + $0x120] ss:$28 sps:$4 sm:$0xff]  }
   0xd   :  { %v2368_v37 = vld [vmem:[%s3517_s3 + $0x18c] ss:$28 sps:$4 sm:$0xff]   ;;  %v2374_v41 = vld [vmem:[%s3517_s3 + $0x1c4] ss:$28 sps:$4 sm:$0xff]   ;;  %v2380_v45 = vld [vmem:[%s3517_s3 + $0x1fc] ss:$28 sps:$4 sm:$0xff]  }
   0xe   :  { %1638 = vmatpush1.bf16.msra.mxu0 %v2343_v20  ;;  %v2373_v40 = vld [vmem:[%s3517_s3 + $0x188] ss:$28 sps:$4 sm:$0xff]   ;;  %v2379_v44 = vld [vmem:[%s3517_s3 + $0x1c0] ss:$28 sps:$4 sm:$0xff]   ;;  %v2364_v46 = vld [vmem:[%s3517_s3 + $0x158] ss:$28 sps:$4 sm:$0xff]  }
   0xf   :  { %142 = vmatpush1.bf16.msra.mxu1 %v93_v19  ;;  %1639 = vmatprep.subr.bf16.mxu0 %v2344_v21  ;;  %v2372_v47 = vld [vmem:[%s3517_s3 + $0x194] ss:$28 sps:$4 sm:$0xff]   ;;  %v2378_v51 = vld [vmem:[%s3517_s3 + $0x1cc] ss:$28 sps:$4 sm:$0xff]   ;;  %v2384_v55 = vld [vmem:[%s3517_s3 + $0x204] ss:$28 sps:$4 sm:$0xff]  }
  0x10   :  { %1715 = vmatprep.subr.bf16.mxu1 %v2330_v18  ;;  %v2385_v48 = vld [vmem:[%s3517_s3 + $0x1f8] ss:$28 sps:$4 sm:$0xff]   ;;  %v2370_v49 = vld [vmem:[%s3517_s3 + $0x190] ss:$28 sps:$4 sm:$0xff]   ;;  %v2376_v54 = vld [vmem:[%s3517_s3 + $0x1c8] ss:$28 sps:$4 sm:$0xff]  }
  0x11   :  { %v2386_v50 = vld [vmem:[%s3517_s3 + $0x234] ss:$28 sps:$4 sm:$0xff]   ;;  %v2392_v53 = vld [vmem:[%s3517_s3 + $0x26c] ss:$28 sps:$4 sm:$0xff]   ;;  %v2398_v57 = vld [vmem:[%s3517_s3 + $0x2a4] ss:$28 sps:$4 sm:$0xff]  }
  0x12   :  { %2027 = vmatmul.mubr.msk.bf16.vlgmr.msra.gmra.mrb[4].mxu1 %vm81_vm1, %v22_v9  ;;  %1640 = vmatpush1.bf16.msra.mxu0 %v2349_v24  ;;  %v2391_v52 = vld [vmem:[%s3517_s3 + $0x230] ss:$28 sps:$4 sm:$0xff]   ;;  %v2397_v56 = vld [vmem:[%s3517_s3 + $0x268] ss:$28 sps:$4 sm:$0xff]   ;;  %v2382_v58 = vld [vmem:[%s3517_s3 + $0x200] ss:$28 sps:$4 sm:$0xff]  }
  0x13   :  { %1716 = vmatpush1.bf16.msra.mxu1 %v2328_v22  ;;  %1641 = vmatprep.subr.bf16.mxu0 %v2350_v25  ;;  %v2390_v59 = vld [vmem:[%s3517_s3 + $0x23c] ss:$28 sps:$4 sm:$0xff]   ;;  %v2396_v63 = vld [vmem:[%s3517_s3 + $0x274] ss:$28 sps:$4 sm:$0xff]   ;;  %v2402_v2 = vld [vmem:[%s3517_s3 + $0x2ac] ss:$28 sps:$4 sm:$0xff]  }
  0x14   :  { %1717 = vmatprep.subr.bf16.mxu1 %v2336_v23  ;;  %v2403_v60 = vld [vmem:[%s3517_s3 + $0x2a0] ss:$28 sps:$4 sm:$0xff]   ;;  %v2388_v62 = vld [vmem:[%s3517_s3 + $0x238] ss:$28 sps:$4 sm:$0xff]   ;;  %v2394_v1 = vld [vmem:[%s3517_s3 + $0x270] ss:$28 sps:$4 sm:$0xff]  }
  0x15   :  { %v2404_v61 = vld [vmem:[%s3517_s3 + $0x2dc] ss:$28 sps:$4 sm:$0xff]   ;;  %v2400_v3 = vld [vmem:[%s3517_s3 + $0x2a8] ss:$28 sps:$4 sm:$0xff]   ;;  %v2410_v6 = vld [vmem:[%s3517_s3 + $0x314] ss:$28 sps:$4 sm:$0xff]  }
  0x16   :  { %1642 = vmatpush1.bf16.msra.mxu0 %v2355_v28  ;;  %v2409_v0 = vld [vmem:[%s3517_s3 + $0x2d8] ss:$28 sps:$4 sm:$0xff]   ;;  %v2408_v4 = vld [vmem:[%s3517_s3 + $0x2e4] ss:$28 sps:$4 sm:$0xff]   ;;  %v2415_v9 = vld [vmem:[%s3517_s3 + $0x310] ss:$28 sps:$4 sm:$0xff]  }
  0x17   :  { %1718 = vmatpush1.bf16.msra.mxu1 %v2334_v26  ;;  %1643 = vmatprep.subr.bf16.mxu0 %v2356_v29  ;;  %v2406_v5 = vld [vmem:[%s3517_s3 + $0x2e0] ss:$28 sps:$4 sm:$0xff]   ;;  %v2412_v8 = vld [vmem:[%s3517_s3 + $0x318] ss:$28 sps:$4 sm:$0xff]   ;;  %v2416_v10 = vld [vmem:[%s3517_s3 + $0x34c] ss:$28 sps:$4 sm:$0xff]  }
  0x18   :  { %1719 = vmatprep.subr.bf16.mxu1 %v2342_v27  ;;  %v2414_v7 = vld [vmem:[%s3517_s3 + $0x31c] ss:$28 sps:$4 sm:$0xff]   ;;  %v2420_v11 = vld [vmem:[%s3517_s3 + $0x354] ss:$28 sps:$4 sm:$0xff]   ;;  %v2421_v13 = vld [vmem:[%s3517_s3 + $0x348] ss:$28 sps:$4 sm:$0xff]  }
  0x19   :  { %v2418_v12 = vld [vmem:[%s3517_s3 + $0x350] ss:$28 sps:$4 sm:$0xff]   ;;  %v2424_v14 = vld [vmem:[%s3517_s3 + $0x384] ss:$28 sps:$4 sm:$0xff]  }
  0x1a   :  { %1644 = vmatpush1.bf16.msra.mxu0 %v2361_v32  ;;  %v2427_v15 = vld [vmem:[%s3517_s3 + $0x38c] ss:$28 sps:$4 sm:$0xff]  }
  0x1b   :  { %1720 = vmatpush1.bf16.msra.mxu1 %v2340_v30  ;;  %1645 = vmatprep.subr.bf16.mxu0 %v2362_v33 }
  0x1c   :  { %1721 = vmatprep.subr.bf16.mxu1 %v2348_v31 }
  0x1e   :  { %1646 = vmatpush1.bf16.msra.mxu0 %v2367_v36 }
  0x1f   :  { %1722 = vmatpush1.bf16.msra.mxu1 %v2346_v34  ;;  %1647 = vmatprep.subr.bf16.mxu0 %v2368_v37 }
  0x20   :  { %1723 = vmatprep.subr.bf16.mxu1 %v2354_v35 }
  0x22   :  { %1648 = vmatpush1.bf16.msra.mxu0 %v2373_v40 }
  0x23   :  { %1724 = vmatpush1.bf16.msra.mxu1 %v2352_v38  ;;  %1649 = vmatprep.subr.bf16.mxu0 %v2374_v41 }
  0x24   :  { %1725 = vmatprep.subr.bf16.mxu1 %v2360_v39 }
  0x26   :  { %1650 = vmatpush1.bf16.msra.mxu0 %v2379_v44 }
  0x27   :  { %1726 = vmatpush1.bf16.msra.mxu1 %v2358_v42  ;;  %1651 = vmatprep.subr.bf16.mxu0 %v2380_v45 }
  0x28   :  { %1727 = vmatprep.subr.bf16.mxu1 %v2366_v43 }
  0x2a   :  { %1652 = vmatpush1.bf16.msra.mxu0 %v2385_v48 }
  0x2b   :  { %1728 = vmatpush1.bf16.msra.mxu1 %v2364_v46  ;;  %1653 = vmatprep.subr.bf16.mxu0 %v2386_v50 }
  0x2c   :  { %1729 = vmatprep.subr.bf16.mxu1 %v2372_v47 }
  0x2e   :  { %1654 = vmatpush1.bf16.msra.mxu0 %v2391_v52 }
  0x2f   :  { %1730 = vmatpush1.bf16.msra.mxu1 %v2370_v49  ;;  %1655 = vmatprep.subr.bf16.mxu0 %v2392_v53 }
  0x30   :  { %1731 = vmatprep.subr.bf16.mxu1 %v2378_v51 }
  0x32   :  { %1656 = vmatpush1.bf16.msra.mxu0 %v2397_v56 }
  0x33   :  { %1732 = vmatpush1.bf16.msra.mxu1 %v2376_v54  ;;  %1657 = vmatprep.subr.bf16.mxu0 %v2398_v57 }
  0x34   :  { %1733 = vmatprep.subr.bf16.mxu1 %v2384_v55 }
  0x36   :  { %1658 = vmatpush1.bf16.msra.mxu0 %v2403_v60 }
  0x37   :  { %1734 = vmatpush1.bf16.msra.mxu1 %v2382_v58  ;;  %1659 = vmatprep.subr.bf16.mxu0 %v2404_v61 }
  0x38   :  { %1735 = vmatprep.subr.bf16.mxu1 %v2390_v59 }
  0x3a   :  { %1660 = vmatpush1.bf16.msra.mxu0 %v2409_v0 }
  0x3b   :  { %1736 = vmatpush1.bf16.msra.mxu1 %v2388_v62  ;;  %1661 = vmatprep.subr.bf16.mxu0 %v2410_v6 }
  0x3c   :  { %1737 = vmatprep.subr.bf16.mxu1 %v2396_v63 }
  0x3e   :  { %1662 = vmatpush1.bf16.msra.mxu0 %v2415_v9 }
  0x3f   :  { %1738 = vmatpush1.bf16.msra.mxu1 %v2394_v1  ;;  %1663 = vmatprep.subr.bf16.mxu0 %v2416_v10 }
  0x40   :  { %1739 = vmatprep.subr.bf16.mxu1 %v2402_v2 }
  0x42   :  { %1664 = vmatpush1.bf16.msra.mxu0 %v2421_v13 }
  0x43   :  { %1740 = vmatpush1.bf16.msra.mxu1 %v2400_v3  ;;  %1674 = vmatprep.subr.bf16.mxu0 %v2424_v14 }
  0x44   :  { %1741 = vmatprep.subr.bf16.mxu1 %v2408_v4 }
  0x47   :  { %1742 = vmatpush1.bf16.msra.mxu1 %v2406_v5 }
  0x48   :  { %1743 = vmatprep.subr.bf16.mxu1 %v2414_v7 }
  0x4b   :  { %1744 = vmatpush1.bf16.msra.mxu1 %v2412_v8 }
  0x4c   :  { %1745 = vmatprep.subr.bf16.mxu1 %v2420_v11 }
  0x4f   :  { %1746 = vmatpush1.bf16.msra.mxu1 %v2418_v12 }
  0x50   :  { %1756 = vmatprep.subr.bf16.mxu1 %v2427_v15 }
  0x51   :  { %10 = vsyncpa [#allocation3], 0  ;;  %v31_v16 = vlaneseq  ;;  %v2961_v19 = vld [vmem:[%s3516_s2] sm:$0xf]  ;;  %v2425_v34 = vld [vmem:[%s3517_s3 + $0x388] ss:$28 sps:$4 sm:$0xff]  }
  0x52   :  { %v2422_v33 = vld [vmem:[%s3517_s3 + $0x380] ss:$28 sps:$4 sm:$0xff]   ;;  %v2428_v41 = vld [vmem:[%s3517_s3 + $0x3b8] ss:$28 sps:$4 sm:$0xff]   ;;  %v2434_v49 = vld [vmem:[%s3517_s3 + $0x3f0] ss:$28 sps:$4 sm:$0xff]  }
  0x53   :  { %v2955_v17 = vshrl.u32 %v31_v16, 7  ;;  %v2430_v37 = vld [vmem:[%s3517_s3 + $0x3bc] ss:$28 sps:$4 sm:$0xff]   ;;  %v2433_v38 = vld [vmem:[%s3517_s3 + $0x3c4] ss:$28 sps:$4 sm:$0xff]   ;;  %vm2000_vm2 = vcmask 130048  }
  0x54   :  { %v2431_v42 = vld [vmem:[%s3517_s3 + $0x3c0] ss:$28 sps:$4 sm:$0xff]   ;;  %v2436_v45 = vld [vmem:[%s3517_s3 + $0x3f4] ss:$28 sps:$4 sm:$0xff]   ;;  %v2442_v52 = vld [vmem:[%s3517_s3 + $0x42c] ss:$28 sps:$4 sm:$0xff]  }
  0x55   :  { %v33_v18 = vsub.s32 0, %v2955_v17  ;;  %v37_v20 = vsub.s32 1, %v2955_v17  ;;  %v45_v28 = vsub.s32 3, %v2955_v17  ;;  %v2439_v46 = vld [vmem:[%s3517_s3 + $0x3fc] ss:$28 sps:$4 sm:$0xff]  }
  0x56   :  { %v2437_v50 = vld [vmem:[%s3517_s3 + $0x3f8] ss:$28 sps:$4 sm:$0xff]   ;;  %v2440_v54 = vld [vmem:[%s3517_s3 + $0x428] ss:$28 sps:$4 sm:$0xff]   ;;  %v2443_v55 = vld [vmem:[%s3517_s3 + $0x430] ss:$28 sps:$4 sm:$0xff]  }
  0x57   :  { %v34_v21 = vrot.slane %v2961_v19, %v33_v18  ;;  %v38_v22 = vrot.slane %v2961_v19, %v37_v20  ;;  %v46_v35 = vrot.slane %v2961_v19, %v45_v28  ;;  %v2445_v53 = vld [vmem:[%s3517_s3 + $0x434] ss:$28 sps:$4 sm:$0xff]   ;;  %v2448_v56 = vld [vmem:[%s3517_s3 + $0x464] ss:$28 sps:$4 sm:$0xff]   ;;  %v2451_v57 = vld [vmem:[%s3517_s3 + $0x46c] ss:$28 sps:$4 sm:$0xff]  }
  0x58   :  { %v2446_v58 = vld [vmem:[%s3517_s3 + $0x460] ss:$28 sps:$4 sm:$0xff]   ;;  %v2449_v59 = vld [vmem:[%s3517_s3 + $0x468] ss:$28 sps:$4 sm:$0xff]   ;;  %v2452_v62 = vld [vmem:[%s3517_s3 + $0x498] ss:$28 sps:$4 sm:$0xff]  }
  0x59   :  { %v2454_v60 = vld [vmem:[%s3517_s3 + $0x49c] ss:$28 sps:$4 sm:$0xff]   ;;  %v2457_v61 = vld [vmem:[%s3517_s3 + $0x4a4] ss:$28 sps:$4 sm:$0xff]   ;;  %v2460_v0 = vld [vmem:[%s3517_s3 + $0x4d4] ss:$28 sps:$4 sm:$0xff]  }
  0x5a   :  { %v2455_v63 = vld [vmem:[%s3517_s3 + $0x4a0] ss:$28 sps:$4 sm:$0xff]   ;;  %v2458_v2 = vld [vmem:[%s3517_s3 + $0x4d0] ss:$28 sps:$4 sm:$0xff]   ;;  %v2461_v3 = vld [vmem:[%s3517_s3 + $0x4d8] ss:$28 sps:$4 sm:$0xff]  }
  0x5b   :  { %v2463_v1 = vld [vmem:[%s3517_s3 + $0x4dc] ss:$28 sps:$4 sm:$0xff]   ;;  %v2466_v4 = vld [vmem:[%s3517_s3 + $0x50c] ss:$28 sps:$4 sm:$0xff]   ;;  %v2469_v5 = vld [vmem:[%s3517_s3 + $0x514] ss:$28 sps:$4 sm:$0xff]  }
  0x5c   :  { %v2464_v6 = vld [vmem:[%s3517_s3 + $0x508] ss:$28 sps:$4 sm:$0xff]   ;;  %v2467_v7 = vld [vmem:[%s3517_s3 + $0x510] ss:$28 sps:$4 sm:$0xff]   ;;  %v2470_v10 = vld [vmem:[%s3517_s3 + $0x540] ss:$28 sps:$4 sm:$0xff]  }
  0x5d   :  { %v2472_v8 = vld [vmem:[%s3517_s3 + $0x544] ss:$28 sps:$4 sm:$0xff]   ;;  %v2475_v9 = vld [vmem:[%s3517_s3 + $0x54c] ss:$28 sps:$4 sm:$0xff]   ;;  %v2478_v12 = vld [vmem:[%s3517_s3 + $0x57c] ss:$28 sps:$4 sm:$0xff]  }
  0x5e   :  { %v2473_v11 = vld [vmem:[%s3517_s3 + $0x548] ss:$28 sps:$4 sm:$0xff]   ;;  %v2476_v14 = vld [vmem:[%s3517_s3 + $0x578] ss:$28 sps:$4 sm:$0xff]   ;;  %v2479_v15 = vld [vmem:[%s3517_s3 + $0x580] ss:$28 sps:$4 sm:$0xff]  }
  0x5f   :  { %v2481_v13 = vld [vmem:[%s3517_s3 + $0x584] ss:$28 sps:$4 sm:$0xff]   ;;  %v2484_v16 = vld [vmem:[%s3517_s3 + $0x5b4] ss:$28 sps:$4 sm:$0xff]  }
  0xdd   :  { %v132_v23 = vpop.f32.mrb[0].mxu1 }
  0xde   :  { %v133_v24 = vadd.f32 %v132_v23, %v34_v21  ;;  %v134_v25 = vpop.f32.mrb[1].mxu1  ;;  %v2487_v21 = vld [vmem:[%s3517_s3 + $0x5bc] ss:$28 sps:$4 sm:$0xff]  }
  0xdf   :  { %v135_v26 = vadd.f32 %v134_v25, %v38_v22  ;;  %v136_v27 = vpop.f32.mrb[2].mxu1  ;;  %v2482_v22 = vld [vmem:[%s3517_s3 + $0x5b0] ss:$28 sps:$4 sm:$0xff]   ;;  %v2485_v23 = vld [vmem:[%s3517_s3 + $0x5b8] ss:$28 sps:$4 sm:$0xff]  }
  0xe0   :  { %v180_v29 = vmax.f32 %v133_v24, 0.0  ;;  %v137_v30 = vpop.f32.mrb[3].mxu1  ;;  %v2490_v24 = vld [vmem:[%s3517_s3 + $0x5ec] ss:$28 sps:$4 sm:$0xff]   ;;  %v2493_v25 = vld [vmem:[%s3517_s3 + $0x5f4] ss:$28 sps:$4 sm:$0xff]  }
  0xe1   :  { %v181_v31 = vmax.f32 %v135_v26, 0.0  ;;  %v2488_v26 = vld [vmem:[%s3517_s3 + $0x5e8] ss:$28 sps:$4 sm:$0xff]   ;;  %v2491_v27 = vld [vmem:[%s3517_s3 + $0x5f0] ss:$28 sps:$4 sm:$0xff]  }
  0xe2   :  { %v2982_v36 = vpack.c.bf16 %v180_v29, %v180_v29  ;;  %v2496_v29 = vld [vmem:[%s3517_s3 + $0x624] ss:$28 sps:$4 sm:$0xff]   ;;  %v2499_v30 = vld [vmem:[%s3517_s3 + $0x62c] ss:$28 sps:$4 sm:$0xff]  }
  0xe3   :  { %v2971_v32 = vpack.c.bf16 %v181_v31, %v181_v31  ;;  %v41_v31 = vsub.s32 2, %v2955_v17 }
  0xe5   :  { %1665 = vmatprep.mubr.bf16.mxu0 %v2971_v32  ;;  %1747 = vmatprep.mubr.bf16.mxu1 %v2971_v32  ;;  %v2992_v39 = vpop.f32.mrb[4].mxu1 }
  0xe6   :  { %1666 = vmatmul.mubr.bf16.vlgmr.msra.gmra.mrb[0].mxu0 %v2982_v36  ;;  %1748 = vmatmul.mubr.bf16.vlgmr.msra.gmra.mrb[8].mxu1 %v2982_v36  ;;  %v175_v40 = vpop.f32.mrb[5].mxu1 }
  0xe7   :  { %1675 = vmatpush1.bf16.msra.mxu0 %v2422_v33  ;;  %1757 = vmatpush1.bf16.msra.mxu1 %v2425_v34  ;;  %v176_v43 = vadd.f32 %v175_v40, %v46_v35  ;;  %v177_v44 = vpop.f32.mrb[6].mxu1  ;;  %v2494_v33 = vld [vmem:[%s3517_s3 + $0x620] ss:$28 sps:$4 sm:$0xff]   ;;  %v2497_v34 = vld [vmem:[%s3517_s3 + $0x628] ss:$28 sps:$4 sm:$0xff]  }
  0xe8   :  { %1676 = vmatprep.subr.bf16.mxu0 %v2430_v37  ;;  %1758 = vmatprep.subr.bf16.mxu1 %v2433_v38  ;;  %v178_v47 = vpop.f32.mrb[7].mxu1  ;;  %v2502_v35 = vld [vmem:[%s3517_s3 + $0x65c] ss:$28 sps:$4 sm:$0xff]   ;;  %v2505_v37 = vld [vmem:[%s3517_s3 + $0x664] ss:$28 sps:$4 sm:$0xff]   ;;  %v42_v38 = vrot.slane %v2961_v19, %v41_v31 }
  0xe9   :  { %v183_v48 = vmax.f32 %v176_v43, 0.0  ;;  %v2500_v40 = vld [vmem:[%s3517_s3 + $0x658] ss:$28 sps:$4 sm:$0xff]   ;;  %v2506_v44 = vld [vmem:[%s3517_s3 + $0x690] ss:$28 sps:$4 sm:$0xff]  }
  0xea   :  { %v2511_v19 = vld [vmem:[%s3517_s3 + $0x69c] ss:$28 sps:$4 sm:$0xff]   ;;  %v174_v43 = vadd.f32 %v2992_v39, %v42_v38  ;;  %v2517_v39 = vld [vmem:[%s3517_s3 + $0x6d4] ss:$28 sps:$4 sm:$0xff]   ;;  %v2572_v38 = vld [vmem:[%s3517_s3 + $0x408] ss:$28 sps:$4 sm:$0xff]  }
  0xeb   :  { %1677 = vmatpush1.bf16.msra.mxu0 %v2428_v41  ;;  %1759 = vmatpush1.bf16.msra.mxu1 %v2431_v42  ;;  %v3014_v51 = vpack.c.bf16 %v183_v48, %v183_v48  ;;  %v2503_v41 = vld [vmem:[%s3517_s3 + $0x660] ss:$28 sps:$4 sm:$0xff]   ;;  %v2508_v42 = vld [vmem:[%s3517_s3 + $0x694] ss:$28 sps:$4 sm:$0xff]   ;;  %v2512_v48 = vld [vmem:[%s3517_s3 + $0x6c8] ss:$28 sps:$4 sm:$0xff]  }
  0xec   :  { %1678 = vmatprep.subr.bf16.mxu0 %v2436_v45  ;;  %1760 = vmatprep.subr.bf16.mxu1 %v2439_v46  ;;  %v2509_v45 = vld [vmem:[%s3517_s3 + $0x698] ss:$28 sps:$4 sm:$0xff]   ;;  %v2514_v46 = vld [vmem:[%s3517_s3 + $0x6cc] ss:$28 sps:$4 sm:$0xff]   ;;  %v182_v47 = vmax.f32 %v174_v43, 0.0 }
  0xed   :  { %1706 = vmatprep.mubr.bf16.mxu0 %v3014_v51  ;;  %1788 = vmatprep.mubr.bf16.mxu1 %v3014_v51  ;;  %v2580_v43 = vld [vmem:[%s3517_s3 + $0x2b4] ss:$28 sps:$4 sm:$0xff]  }
  0xef   :  { %1679 = vmatpush1.bf16.msra.mxu0 %v2434_v49  ;;  %1761 = vmatpush1.bf16.msra.mxu1 %v2437_v50  ;;  %v2515_v49 = vld [vmem:[%s3517_s3 + $0x6d0] ss:$28 sps:$4 sm:$0xff]  }
  0xf0   :  { %1680 = vmatprep.subr.bf16.mxu0 %v2442_v52  ;;  %1762 = vmatprep.subr.bf16.mxu1 %v2445_v53  ;;  %v2520_v50 = vld [vmem:[%s3517_s3 + $0x14] ss:$28 sps:$4 sm:$0xff]   ;;  %v3185_v53 = vpack.c.bf16 %v182_v47, %v182_v47 }
  0xf1   :  { %v2521_v52 = vld [vmem:[%s3517_s3 + $0x1d8] ss:$28 sps:$4 sm:$0xff]   ;;  %v2586_v47 = vld [vmem:[%s3517_s3 + $0x670] ss:$28 sps:$4 sm:$0xff]  }
  0xf3   :  { %1681 = vmatpush1.bf16.msra.mxu0 %v2440_v54  ;;  %1763 = vmatpush1.bf16.msra.mxu1 %v2443_v55  ;;  %v2518_v54 = vld [vmem:[%s3517_s3 + $0x10] ss:$28 sps:$4 sm:$0xff]   ;;  %v2522_v55 = vld [vmem:[%s3517_s3 + $0x18] ss:$28 sps:$4 sm:$0xff]  }
  0xf4   :  { %1682 = vmatprep.subr.bf16.mxu0 %v2448_v56  ;;  %1764 = vmatprep.subr.bf16.mxu1 %v2451_v57  ;;  %v2525_v56 = vld [vmem:[%s3517_s3 + $0x4c] ss:$28 sps:$4 sm:$0xff]  }
  0xf5   :  { %v2526_v57 = vld [vmem:[%s3517_s3 + $0x210] ss:$28 sps:$4 sm:$0xff]  }
  0xf7   :  { %1683 = vmatpush1.bf16.msra.mxu0 %v2446_v58  ;;  %1765 = vmatpush1.bf16.msra.mxu1 %v2449_v59  ;;  %v2523_v58 = vld [vmem:[%s3517_s3 + $0x48] ss:$28 sps:$4 sm:$0xff]   ;;  %v2527_v59 = vld [vmem:[%s3517_s3 + $0x50] ss:$28 sps:$4 sm:$0xff]  }
  0xf8   :  { %1684 = vmatprep.subr.bf16.mxu0 %v2454_v60  ;;  %1766 = vmatprep.subr.bf16.mxu1 %v2457_v61  ;;  %v2530_v60 = vld [vmem:[%s3517_s3 + $0x84] ss:$28 sps:$4 sm:$0xff]  }
  0xf9   :  { %v2531_v61 = vld [vmem:[%s3517_s3 + $0x248] ss:$28 sps:$4 sm:$0xff]  }
  0xfb   :  { %1685 = vmatpush1.bf16.msra.mxu0 %v2452_v62  ;;  %1767 = vmatpush1.bf16.msra.mxu1 %v2455_v63  ;;  %v2528_v62 = vld [vmem:[%s3517_s3 + $0x80] ss:$28 sps:$4 sm:$0xff]  }
  0xfc   :  { %1686 = vmatprep.subr.bf16.mxu0 %v2460_v0  ;;  %1768 = vmatprep.subr.bf16.mxu1 %v2463_v1  ;;  %v2535_v63 = vld [vmem:[%s3517_s3 + $0xbc] ss:$28 sps:$4 sm:$0xff]  }
  0xfd   :  { %v2536_v0 = vld [vmem:[%s3517_s3 + $0x280] ss:$28 sps:$4 sm:$0xff]   ;;  %v2533_v1 = vld [vmem:[%s3517_s3 + $0xb8] ss:$28 sps:$4 sm:$0xff]  }
  0xff   :  { %1687 = vmatpush1.bf16.msra.mxu0 %v2458_v2  ;;  %1769 = vmatpush1.bf16.msra.mxu1 %v2461_v3  ;;  %v2537_v2 = vld [vmem:[%s3517_s3 + $0xc0] ss:$28 sps:$4 sm:$0xff]   ;;  %v2540_v3 = vld [vmem:[%s3517_s3 + $0xf4] ss:$28 sps:$4 sm:$0xff]  }
 0x100   :  { %1688 = vmatprep.subr.bf16.mxu0 %v2466_v4  ;;  %1770 = vmatprep.subr.bf16.mxu1 %v2469_v5  ;;  %v2541_v4 = vld [vmem:[%s3517_s3 + $0x2b8] ss:$28 sps:$4 sm:$0xff]   ;;  %v2538_v5 = vld [vmem:[%s3517_s3 + $0xf0] ss:$28 sps:$4 sm:$0xff]  }
 0x103   :  { %1689 = vmatpush1.bf16.msra.mxu0 %v2464_v6  ;;  %1771 = vmatpush1.bf16.msra.mxu1 %v2467_v7  ;;  %v2542_v6 = vld [vmem:[%s3517_s3 + $0xf8] ss:$28 sps:$4 sm:$0xff]   ;;  %v2545_v7 = vld [vmem:[%s3517_s3 + $0x12c] ss:$28 sps:$4 sm:$0xff]  }
 0x104   :  { %1690 = vmatprep.subr.bf16.mxu0 %v2472_v8  ;;  %1772 = vmatprep.subr.bf16.mxu1 %v2475_v9  ;;  %v2546_v8 = vld [vmem:[%s3517_s3 + $0x2f0] ss:$28 sps:$4 sm:$0xff]   ;;  %v2543_v9 = vld [vmem:[%s3517_s3 + $0x128] ss:$28 sps:$4 sm:$0xff]  }
 0x107   :  { %1691 = vmatpush1.bf16.msra.mxu0 %v2470_v10  ;;  %1773 = vmatpush1.bf16.msra.mxu1 %v2473_v11  ;;  %v2547_v10 = vld [vmem:[%s3517_s3 + $0x130] ss:$28 sps:$4 sm:$0xff]   ;;  %v2550_v11 = vld [vmem:[%s3517_s3 + $0x164] ss:$28 sps:$4 sm:$0xff]  }
 0x108   :  { %1692 = vmatprep.subr.bf16.mxu0 %v2478_v12  ;;  %1774 = vmatprep.subr.bf16.mxu1 %v2481_v13  ;;  %v2551_v12 = vld [vmem:[%s3517_s3 + $0x328] ss:$28 sps:$4 sm:$0xff]   ;;  %v2548_v13 = vld [vmem:[%s3517_s3 + $0x160] ss:$28 sps:$4 sm:$0xff]  }
 0x10b   :  { %1693 = vmatpush1.bf16.msra.mxu0 %v2476_v14  ;;  %1775 = vmatpush1.bf16.msra.mxu1 %v2479_v15  ;;  %v2552_v14 = vld [vmem:[%s3517_s3 + $0x168] ss:$28 sps:$4 sm:$0xff]   ;;  %v2555_v15 = vld [vmem:[%s3517_s3 + $0x19c] ss:$28 sps:$4 sm:$0xff]  }
 0x10c   :  { %1694 = vmatprep.subr.bf16.mxu0 %v2484_v16  ;;  %1776 = vmatprep.subr.bf16.mxu1 %v2487_v21  ;;  %v2556_v16 = vld [vmem:[%s3517_s3 + $0x360] ss:$28 sps:$4 sm:$0xff]   ;;  %v2553_v21 = vld [vmem:[%s3517_s3 + $0x198] ss:$28 sps:$4 sm:$0xff]  }
 0x10f   :  { %1695 = vmatpush1.bf16.msra.mxu0 %v2482_v22  ;;  %1777 = vmatpush1.bf16.msra.mxu1 %v2485_v23  ;;  %v2557_v22 = vld [vmem:[%s3517_s3 + $0x1a0] ss:$28 sps:$4 sm:$0xff]   ;;  %v2560_v23 = vld [vmem:[%s3517_s3 + $0x1d4] ss:$28 sps:$4 sm:$0xff]  }
 0x110   :  { %1696 = vmatprep.subr.bf16.mxu0 %v2490_v24  ;;  %1778 = vmatprep.subr.bf16.mxu1 %v2493_v25  ;;  %v2561_v24 = vld [vmem:[%s3517_s3 + $0x558] ss:$28 sps:$4 sm:$0xff]   ;;  %v2558_v25 = vld [vmem:[%s3517_s3 + $0x1d0] ss:$28 sps:$4 sm:$0xff]  }
 0x113   :  { %1697 = vmatpush1.bf16.msra.mxu0 %v2488_v26  ;;  %1779 = vmatpush1.bf16.msra.mxu1 %v2491_v27  ;;  %v2562_v26 = vld [vmem:[%s3517_s3 + $0x398] ss:$28 sps:$4 sm:$0xff]   ;;  %v2565_v27 = vld [vmem:[%s3517_s3 + $0x20c] ss:$28 sps:$4 sm:$0xff]  }
 0x114   :  { %1698 = vmatprep.subr.bf16.mxu0 %v2496_v29  ;;  %1780 = vmatprep.subr.bf16.mxu1 %v2499_v30  ;;  %v2566_v29 = vld [vmem:[%s3517_s3 + $0x590] ss:$28 sps:$4 sm:$0xff]   ;;  %v2563_v30 = vld [vmem:[%s3517_s3 + $0x208] ss:$28 sps:$4 sm:$0xff]  }
 0x117   :  { %1699 = vmatpush1.bf16.msra.mxu0 %v2494_v33  ;;  %1781 = vmatpush1.bf16.msra.mxu1 %v2497_v34  ;;  %v2567_v33 = vld [vmem:[%s3517_s3 + $0x3d0] ss:$28 sps:$4 sm:$0xff]   ;;  %v2570_v34 = vld [vmem:[%s3517_s3 + $0x244] ss:$28 sps:$4 sm:$0xff]  }
 0x118   :  { %1700 = vmatprep.subr.bf16.mxu0 %v2502_v35  ;;  %1782 = vmatprep.subr.bf16.mxu1 %v2505_v37  ;;  %v2571_v35 = vld [vmem:[%s3517_s3 + $0x5c8] ss:$28 sps:$4 sm:$0xff]   ;;  %v2568_v37 = vld [vmem:[%s3517_s3 + $0x240] ss:$28 sps:$4 sm:$0xff]  }
 0x11b   :  { %1701 = vmatpush1.bf16.msra.mxu0 %v2500_v40  ;;  %1783 = vmatpush1.bf16.msra.mxu1 %v2503_v41  ;;  %v2575_v40 = vld [vmem:[%s3517_s3 + $0x27c] ss:$28 sps:$4 sm:$0xff]  }
 0x11c   :  { %1702 = vmatprep.subr.bf16.mxu0 %v2508_v42  ;;  %1784 = vmatprep.subr.bf16.mxu1 %v2511_v19  ;;  %v2576_v41 = vld [vmem:[%s3517_s3 + $0x600] ss:$28 sps:$4 sm:$0xff]   ;;  %v2573_v42 = vld [vmem:[%s3517_s3 + $0x278] ss:$28 sps:$4 sm:$0xff]  }
 0x11d   :  { %v2577_v19 = vld [vmem:[%s3517_s3 + $0x440] ss:$28 sps:$4 sm:$0xff]  }
 0x11f   :  { %1703 = vmatpush1.bf16.msra.mxu0 %v2506_v44  ;;  %1785 = vmatpush1.bf16.msra.mxu1 %v2509_v45  ;;  %v2581_v44 = vld [vmem:[%s3517_s3 + $0x638] ss:$28 sps:$4 sm:$0xff]   ;;  %v2578_v45 = vld [vmem:[%s3517_s3 + $0x2b0] ss:$28 sps:$4 sm:$0xff]  }
 0x120   :  { %1704 = vmatprep.subr.bf16.mxu0 %v2514_v46  ;;  %1786 = vmatprep.subr.bf16.mxu1 %v2517_v39  ;;  %v2582_v46 = vld [vmem:[%s3517_s3 + $0x478] ss:$28 sps:$4 sm:$0xff]   ;;  %v2585_v39 = vld [vmem:[%s3517_s3 + $0x2ec] ss:$28 sps:$4 sm:$0xff]  }
 0x123   :  { %1705 = vmatpush1.bf16.msra.mxu0 %v2512_v48  ;;  %1787 = vmatpush1.bf16.msra.mxu1 %v2515_v49  ;;  %v2583_v48 = vld [vmem:[%s3517_s3 + $0x2e8] ss:$28 sps:$4 sm:$0xff]   ;;  %v2587_v49 = vld [vmem:[%s3517_s3 + $0x4b0] ss:$28 sps:$4 sm:$0xff]  }
 0x124   :  { %1797 = vmatprep.subr.bf16.mxu0 %v2520_v50  ;;  %2252 = vmatprep.subr.bf16.mxu1 %v2521_v52  ;;  %v2590_v50 = vld [vmem:[%s3517_s3 + $0x324] ss:$28 sps:$4 sm:$0xff]  }
 0x125   :  { %v2591_v52 = vld [vmem:[%s3517_s3 + $0x6a8] ss:$28 sps:$4 sm:$0xff]  }
 0x126   :  { %1707 = vmatmul.mubr.bf16.vlgmr.msra.gmra.mrb[0].mxu0 %v3185_v53  ;;  %1789 = vmatmul.mubr.bf16.vlgmr.msra.gmra.mrb[8].mxu1 %v3185_v53 }
 0x127   :  { %1798 = vmatpush1.bf16.msra.mxu0 %v2518_v54  ;;  %1829 = vmatprep.mubr.bf16.mxu0 %v2971_v32  ;;  %v2588_v54 = vld [vmem:[%s3517_s3 + $0x320] ss:$28 sps:$4 sm:$0xff]  }
 0x128   :  { %2253 = vmatpush3.bf16.msra.mxu1 %v2522_v55  ;;  %1911 = vmatprep.mubr.bf16.mxu1 %v2971_v32  ;;  %v2532_v32 = vld [vmem:[%s3517_s3 + $0x88] ss:$28 sps:$4 sm:$0xff]  }
 0x129   :  { %1799 = vmatprep.subr.bf16.mxu0 %v2525_v56  ;;  %2254 = vmatprep.subr.bf16.mxu1 %v2526_v57  ;;  %v2592_v55 = vld [vmem:[%s3517_s3 + $0x4e8] ss:$28 sps:$4 sm:$0xff]   ;;  %v2595_v56 = vld [vmem:[%s3517_s3 + $0x35c] ss:$28 sps:$4 sm:$0xff]  }
 0x12a   :  { %v2596_v57 = vld [vmem:[%s3517_s3 + $0x6e0] ss:$28 sps:$4 sm:$0xff]  }
 0x12b   :  { %1800 = vmatpush1.bf16.msra.mxu0 %v2523_v58  ;;  %v2593_v58 = vld [vmem:[%s3517_s3 + $0x358] ss:$28 sps:$4 sm:$0xff]  }
 0x12c   :  { %2255 = vmatpush3.bf16.msra.mxu1 %v2527_v59  ;;  %1801 = vmatprep.subr.bf16.mxu0 %v2530_v60  ;;  %v2597_v59 = vld [vmem:[%s3517_s3 + $0x520] ss:$28 sps:$4 sm:$0xff]   ;;  %v2600_v60 = vld [vmem:[%s3517_s3 + $0x394] ss:$28 sps:$4 sm:$0xff]  }
 0x12d   :  { %2256 = vmatprep.subr.bf16.mxu1 %v2531_v61  ;;  %v2598_v61 = vld [vmem:[%s3517_s3 + $0x390] ss:$28 sps:$4 sm:$0xff]  }
 0x12f   :  { %1802 = vmatpush1.bf16.msra.mxu0 %v2528_v62  ;;  %v2603_v62 = vld [vmem:[%s3517_s3 + $0x3cc] ss:$28 sps:$4 sm:$0xff]  }
 0x130   :  { %2257 = vmatpush3.bf16.msra.mxu1 %v2532_v32  ;;  %1803 = vmatprep.subr.bf16.mxu0 %v2535_v63  ;;  %v2601_v32 = vld [vmem:[%s3517_s3 + $0x3c8] ss:$28 sps:$4 sm:$0xff]  }
 0x131   :  { %2258 = vmatprep.subr.bf16.mxu1 %v2536_v0  ;;  %v2606_v63 = vld [vmem:[%s3517_s3 + $0x404] ss:$28 sps:$4 sm:$0xff]  }
 0x132   :  { %v2604_v0 = vld [vmem:[%s3517_s3 + $0x400] ss:$28 sps:$4 sm:$0xff]  }
 0x133   :  { %1804 = vmatpush1.bf16.msra.mxu0 %v2533_v1  ;;  %v2612_v1 = vld [vmem:[%s3517_s3 + $0x474] ss:$28 sps:$4 sm:$0xff]  }
 0x134   :  { %2259 = vmatpush3.bf16.msra.mxu1 %v2537_v2  ;;  %1805 = vmatprep.subr.bf16.mxu0 %v2540_v3  ;;  %v2610_v2 = vld [vmem:[%s3517_s3 + $0x470] ss:$28 sps:$4 sm:$0xff]  }
 0x135   :  { %2260 = vmatprep.subr.bf16.mxu1 %v2541_v4  ;;  %v2615_v3 = vld [vmem:[%s3517_s3 + $0x4ac] ss:$28 sps:$4 sm:$0xff]  }
 0x136   :  { %v2613_v4 = vld [vmem:[%s3517_s3 + $0x4a8] ss:$28 sps:$4 sm:$0xff]  }
 0x137   :  { %1806 = vmatpush1.bf16.msra.mxu0 %v2538_v5  ;;  %v2618_v5 = vld [vmem:[%s3517_s3 + $0x4e4] ss:$28 sps:$4 sm:$0xff]  }
 0x138   :  { %2261 = vmatpush3.bf16.msra.mxu1 %v2542_v6  ;;  %1807 = vmatprep.subr.bf16.mxu0 %v2545_v7  ;;  %v2616_v6 = vld [vmem:[%s3517_s3 + $0x4e0] ss:$28 sps:$4 sm:$0xff]  }
 0x139   :  { %2262 = vmatprep.subr.bf16.mxu1 %v2546_v8  ;;  %v2621_v7 = vld [vmem:[%s3517_s3 + $0x51c] ss:$28 sps:$4 sm:$0xff]  }
 0x13a   :  { %v2619_v8 = vld [vmem:[%s3517_s3 + $0x518] ss:$28 sps:$4 sm:$0xff]  }
 0x13b   :  { %1808 = vmatpush1.bf16.msra.mxu0 %v2543_v9  ;;  %v2624_v9 = vld [vmem:[%s3517_s3 + $0x554] ss:$28 sps:$4 sm:$0xff]  }
 0x13c   :  { %2263 = vmatpush3.bf16.msra.mxu1 %v2547_v10  ;;  %1809 = vmatprep.subr.bf16.mxu0 %v2550_v11  ;;  %v2622_v10 = vld [vmem:[%s3517_s3 + $0x550] ss:$28 sps:$4 sm:$0xff]  }
 0x13d   :  { %2264 = vmatprep.subr.bf16.mxu1 %v2551_v12  ;;  %v2627_v11 = vld [vmem:[%s3517_s3 + $0x58c] ss:$28 sps:$4 sm:$0xff]  }
 0x13e   :  { %v2625_v12 = vld [vmem:[%s3517_s3 + $0x588] ss:$28 sps:$4 sm:$0xff]  }
 0x13f   :  { %1810 = vmatpush1.bf16.msra.mxu0 %v2548_v13  ;;  %v2630_v13 = vld [vmem:[%s3517_s3 + $0x5c4] ss:$28 sps:$4 sm:$0xff]  }
 0x140   :  { %2265 = vmatpush3.bf16.msra.mxu1 %v2552_v14  ;;  %1811 = vmatprep.subr.bf16.mxu0 %v2555_v15  ;;  %v2628_v14 = vld [vmem:[%s3517_s3 + $0x5c0] ss:$28 sps:$4 sm:$0xff]  }
 0x141   :  { %2266 = vmatprep.subr.bf16.mxu1 %v2556_v16  ;;  %v2633_v15 = vld [vmem:[%s3517_s3 + $0x5fc] ss:$28 sps:$4 sm:$0xff]  }
 0x142   :  { %v2631_v16 = vld [vmem:[%s3517_s3 + $0x5f8] ss:$28 sps:$4 sm:$0xff]  }
 0x143   :  { %1812 = vmatpush1.bf16.msra.mxu0 %v2553_v21  ;;  %v2636_v21 = vld [vmem:[%s3517_s3 + $0x634] ss:$28 sps:$4 sm:$0xff]  }
 0x144   :  { %2267 = vmatpush3.bf16.msra.mxu1 %v2557_v22  ;;  %1813 = vmatprep.subr.bf16.mxu0 %v2560_v23  ;;  %v2634_v22 = vld [vmem:[%s3517_s3 + $0x630] ss:$28 sps:$4 sm:$0xff]  }
 0x145   :  { %2274 = vmatprep.subr.bf16.mxu1 %v2561_v24  ;;  %v2639_v23 = vld [vmem:[%s3517_s3 + $0x66c] ss:$28 sps:$4 sm:$0xff]  }
 0x146   :  { %v2637_v24 = vld [vmem:[%s3517_s3 + $0x668] ss:$28 sps:$4 sm:$0xff]  }
 0x147   :  { %1912 = vmatmul.mubr.bf16.vlgmr.msra.gmra.mrb[12].mxu1 %v2982_v36  ;;  %1814 = vmatpush1.bf16.msra.mxu0 %v2558_v25  ;;  %v2642_v25 = vld [vmem:[%s3517_s3 + $0x6a4] ss:$28 sps:$4 sm:$0xff]  }
 0x148   :  { %2275 = vmatpush3.bf16.msra.mxu1 %v2562_v26  ;;  %1951 = vmatprep.mubr.bf16.mxu1 %v3014_v51  ;;  %v2640_v26 = vld [vmem:[%s3517_s3 + $0x6a0] ss:$28 sps:$4 sm:$0xff]  }
 0x149   :  { %1815 = vmatprep.subr.bf16.mxu0 %v2565_v27  ;;  %2276 = vmatprep.subr.bf16.mxu1 %v2566_v29  ;;  %v2645_v27 = vld [vmem:[%s3517_s3 + $0x6dc] ss:$28 sps:$4 sm:$0xff]  }
 0x14a   :  { %v2643_v29 = vld [vmem:[%s3517_s3 + $0x6d8] ss:$28 sps:$4 sm:$0xff]  }
 0x14b   :  { %1816 = vmatpush1.bf16.msra.mxu0 %v2563_v30  ;;  %v3482_v30 = vld [vmem:[%s3518_s4] sm:$0x7f] }
 0x14c   :  { %2277 = vmatpush3.bf16.msra.mxu1 %v2567_v33  ;;  %1817 = vmatprep.subr.bf16.mxu0 %v2570_v34  ;;  %v449_v33 = vrot.slane %v3482_v30, %v33_v18  ;;  %v457_v34 = vrot.slane %v3482_v30, %v41_v31 }
 0x14d   :  { %2278 = vmatprep.subr.bf16.mxu1 %v2571_v35  ;;  %v453_v35 = vrot.slane %v3482_v30, %v37_v20 }
 0x14f   :  { %1818 = vmatpush1.bf16.msra.mxu0 %v2568_v37 }
 0x150   :  { %2279 = vmatpush3.bf16.msra.mxu1 %v2572_v38  ;;  %1819 = vmatprep.subr.bf16.mxu0 %v2575_v40 }
 0x151   :  { %2280 = vmatprep.subr.bf16.mxu1 %v2576_v41 }
 0x153   :  { %1820 = vmatpush1.bf16.msra.mxu0 %v2573_v42 }
 0x154   :  { %2281 = vmatpush3.bf16.msra.mxu1 %v2577_v19  ;;  %1821 = vmatprep.subr.bf16.mxu0 %v2580_v43 }
 0x155   :  { %2282 = vmatprep.subr.bf16.mxu1 %v2581_v44 }
 0x157   :  { %1822 = vmatpush1.bf16.msra.mxu0 %v2578_v45 }
 0x158   :  { %2283 = vmatpush3.bf16.msra.mxu1 %v2582_v46  ;;  %1823 = vmatprep.subr.bf16.mxu0 %v2585_v39 }
 0x159   :  { %2284 = vmatprep.subr.bf16.mxu1 %v2586_v47 }
 0x15b   :  { %1824 = vmatpush1.bf16.msra.mxu0 %v2583_v48 }
 0x15c   :  { %2285 = vmatpush3.bf16.msra.mxu1 %v2587_v49  ;;  %1825 = vmatprep.subr.bf16.mxu0 %v2590_v50 }
 0x15d   :  { %2286 = vmatprep.subr.bf16.mxu1 %v2591_v52 }
 0x15f   :  { %1826 = vmatpush1.bf16.msra.mxu0 %v2588_v54 }
 0x160   :  { %2287 = vmatpush3.bf16.msra.mxu1 %v2592_v55  ;;  %1827 = vmatprep.subr.bf16.mxu0 %v2595_v56 }
 0x161   :  { %2288 = vmatprep.subr.bf16.mxu1 %v2596_v57 }
 0x163   :  { %1828 = vmatpush1.bf16.msra.mxu0 %v2593_v58 }
 0x164   :  { %2289 = vmatpush3.bf16.msra.mxu1 %v2597_v59  ;;  %1838 = vmatprep.subr.bf16.mxu0 %v2600_v60 }
 0x166   :  { %1830 = vmatmul.mubr.bf16.vlgmr.msra.gmra.mrb[4].mxu0 %v2982_v36  ;;  %v2609_v36 = vld [vmem:[%s3517_s3 + $0x43c] ss:$28 sps:$4 sm:$0xff]  }
 0x167   :  { %1952 = vmatmul.mubr.bf16.vlgmr.msra.gmra.mrb[16].mxu1 %v3185_v53  ;;  %1839 = vmatpush1.bf16.msra.mxu0 %v2598_v61 }
 0x168   :  { %1870 = vmatprep.mubr.bf16.mxu0 %v3014_v51  ;;  %1840 = vmatprep.subr.bf16.mxu0 %v2603_v62  ;;  %v2607_v51 = vld [vmem:[%s3517_s3 + $0x438] ss:$28 sps:$4 sm:$0xff]   ;;  %s2699_s3 = smov [#allocation2]  }
 0x169   :  { %s2008_s4 = sshll.u32 %s2699_s3, 4  ;;  %s2009_s4 = int_to_ptr.vmem [resolvable:$true] %s2008_s4 }
 0x16a   :  { %s2674_s1 = scalar_lea.vmem %s2009_s4, 896  ;;  %p2679_p1 = scmp.lt.s32.totalorder %s2009_s4, %s2009_s4 }
 0x16b   :  { %1841 = vmatpush1.bf16.msra.mxu0 %v2601_v32  ;;  %p2675_p0 = scmp.ne.s32.totalorder %s2009_s4, %s2674_s1  ;;  %p2680_p2 = scmp.lt.s32.totalorder %s2674_s1, %s2674_s1 }
 0x16c   :  { %1842 = vmatprep.subr.bf16.mxu0 %v2606_v63 }
 0x16d   :  { %p2681_p3 = por %p2680_p2, %p2679_p1 }
 0x16f   :  { %1843 = vmatpush1.bf16.msra.mxu0 %v2604_v0  ;;  %p2682_p4 = pnand %p2681_p3, %p2675_p0 }
 0x170   :  { %1844 = vmatprep.subr.bf16.mxu0 %v2609_v36 }
 0x173   :  { %1845 = vmatpush1.bf16.msra.mxu0 %v2607_v51 }
 0x174   :  { %1846 = vmatprep.subr.bf16.mxu0 %v2612_v1 }
 0x177   :  { %1847 = vmatpush1.bf16.msra.mxu0 %v2610_v2 }
 0x178   :  { %1848 = vmatprep.subr.bf16.mxu0 %v2615_v3 }
 0x17b   :  { %1849 = vmatpush1.bf16.msra.mxu0 %v2613_v4  ;;  %v472_v4 = vsub.s32 6, %v2955_v17 }
 0x17c   :  { %1850 = vmatprep.subr.bf16.mxu0 %v2618_v5 }
 0x17d   :  { %v473_v5 = vrot.slane %v3482_v30, %v472_v4 }
 0x17f   :  { %1851 = vmatpush1.bf16.msra.mxu0 %v2616_v6 }
 0x180   :  { %1852 = vmatprep.subr.bf16.mxu0 %v2621_v7 }
 0x183   :  { %1853 = vmatpush1.bf16.msra.mxu0 %v2619_v8 }
 0x184   :  { %1854 = vmatprep.subr.bf16.mxu0 %v2624_v9 }
 0x187   :  { %1855 = vmatpush1.bf16.msra.mxu0 %v2622_v10 }
 0x188   :  { %1856 = vmatprep.subr.bf16.mxu0 %v2627_v11 }
 0x18b   :  { %1857 = vmatpush1.bf16.msra.mxu0 %v2625_v12 }
 0x18c   :  { %1858 = vmatprep.subr.bf16.mxu0 %v2630_v13 }
 0x18f   :  { %1859 = vmatpush1.bf16.msra.mxu0 %v2628_v14 }
 0x190   :  { %1860 = vmatprep.subr.bf16.mxu0 %v2633_v15 }
 0x193   :  { %1861 = vmatpush1.bf16.msra.mxu0 %v2631_v16 }
 0x194   :  { %1862 = vmatprep.subr.bf16.mxu0 %v2636_v21 }
 0x197   :  { %1863 = vmatpush1.bf16.msra.mxu0 %v2634_v22  ;;  %v464_v22 = vsub.s32 4, %v2955_v17 }
 0x198   :  { %1864 = vmatprep.subr.bf16.mxu0 %v2639_v23  ;;  %v468_v23 = vsub.s32 5, %v2955_v17 }
 0x19b   :  { %1865 = vmatpush1.bf16.msra.mxu0 %v2637_v24  ;;  %v465_v24 = vrot.slane %v3482_v30, %v464_v22 }
 0x19c   :  { %1866 = vmatprep.subr.bf16.mxu0 %v2642_v25  ;;  %v469_v25 = vrot.slane %v3482_v30, %v468_v23 }
 0x19f   :  { %1867 = vmatpush1.bf16.msra.mxu0 %v2640_v26 }
 0x1a0   :  { %1868 = vmatprep.subr.bf16.mxu0 %v2645_v27 }
 0x1a3   :  { %1869 = vmatpush1.bf16.msra.mxu0 %v2643_v29 }
 0x1a6   :  { %1871 = vmatmul.mubr.bf16.vlgmr.msra.gmra.mrb[4].mxu0 %v3185_v53  ;;  %v461_v53 = vrot.slane %v3482_v30, %v45_v28 }
 0x1f9   :  { %v1708_v37 = vpop.f32.mrb[0].mxu0  ;;  %v1790_v38 = vpop.f32.mrb[8].mxu1 }
 0x1fa   :  { %v2296_v40 = vadd.f32 %v1708_v37, %v449_v33  ;;  %v2298_v41 = vadd.f32 %v1790_v38, %v457_v34  ;;  %v1710_v42 = vpop.f32.mrb[1].mxu0  ;;  %v1792_v19 = vpop.f32.mrb[9].mxu1 }
 0x1fb   :  { %v2297_v43 = vadd.f32 %v1710_v42, %v453_v35  ;;  %v2299_v18 = vadd.f32 %v1792_v19, %v461_v53  ;;  %v1712_v44 = vpop.f32.mrb[2].mxu0  ;;  %v1794_v45 = vpop.f32.mrb[10].mxu1 }
 0x1fc   :  { %v1959_v46 = vsub.f32 0.0, %v2296_v40  ;;  %v1961_v31 = vsub.f32 0.0, %v2298_v41  ;;  %v1713_v39 = vpop.f32.mrb[3].mxu0  ;;  %v1795_v47 = vpop.f32.mrb[11].mxu1 }
 0x1fd   :  { %v1960_v48 = vsub.f32 0.0, %v2297_v43  ;;  %v1962_v20 = vsub.f32 0.0, %v2299_v18 }
 0x1fe   :  { %v1966_v49 = vmul.f32 1.442695, %v1959_v46  ;;  %v1970_v50 = vmul.f32 1.442695, %v1961_v31 }
 0x1ff   :  { %v1968_v52 = vmul.f32 1.442695, %v1960_v48  ;;  %v1972_v28 = vmul.f32 1.442695, %v1962_v20 }
 0x200   :  { %2646 = vpow2.f32 %v1966_v49 }
 0x201   :  { %2648 = vpow2.f32 %v1970_v50 }
 0x202   :  { %2650 = vpow2.f32 %v1968_v52 }
 0x203   :  { %2652 = vpow2.f32 %v1972_v28 }
 0x20a   :  { %v2647_v54 = vpop.eup %2646 }
 0x20b   :  { %v2649_v55 = vpop.eup %2648  ;;  %v1980_v56 = vadd.f32 1.0, %v2647_v54 }
 0x20c   :  { %v2651_v57 = vpop.eup %2650  ;;  %v1982_v58 = vadd.f32 1.0, %v2649_v55 }
 0x20d   :  { %v2653_v59 = vpop.eup %2652  ;;  %2654 = vrcp.f32 %v1980_v56  ;;  %v1981_v60 = vadd.f32 1.0, %v2651_v57 }
 0x20e   :  { %2656 = vrcp.f32 %v1982_v58  ;;  %v1983_v61 = vadd.f32 1.0, %v2653_v59 }
 0x20f   :  { %2658 = vrcp.f32 %v1981_v60 }
 0x210   :  { %2660 = vrcp.f32 %v1983_v61 }
 0x217   :  { %v2655_v62 = vpop.eup %2654 }
 0x218   :  { %v2657_v32 = vpop.eup %2656  ;;  %1994 = vst [vmem:[#allocation2] sm:$0xff] %v2655_v62 }
 0x219   :  { %v2659_v63 = vpop.eup %2658  ;;  %1996 = vst [vmem:[#allocation2 + $0x10] sm:$0xff] %v2657_v32 }
 0x21a   :  { %v2661_v0 = vpop.eup %2660  ;;  %1995 = vst [vmem:[#allocation2 + $0x8] sm:$0xff] %v2659_v63  ;;  %v2268_v36 = vpop.f32.mrb[12].mxu1 }
 0x21b   :  { %1997 = vst [vmem:[#allocation2 + $0x18] sm:$0xff] %v2661_v0  ;;  %v2269_v51 = vpop.f32.mrb[13].mxu1 }
 0x21c   :  { %v2270_v1 = vadd.f32 %v2269_v51, %v2268_v36  ;;  %v2271_v2 = vpop.f32.mrb[14].mxu1 }
 0x21d   :  { %v2272_v3 = vpop.f32.mrb[15].mxu1 }
 0x21e   :  { %v1914_v8 = vadd.f32 %v2270_v1, %v473_v5 }
 0x23a   :  { %v2290_v6 = vpop.f32.mrb[16].mxu1 }
 0x23b   :  { %v2291_v7 = vpop.f32.mrb[17].mxu1 }
 0x23c   :  { %v2292_v9 = vadd.f32 %v2291_v7, %v2290_v6  ;;  %v2293_v10 = vpop.f32.mrb[18].mxu1 }
 0x23d   :  { %v2294_v11 = vpop.f32.mrb[19].mxu1 }
 0x23e   :  { %v1954_v12 = vadd.f32 %v2292_v9, %v1914_v8 }
 0x240   :  { %v1965_v13 = vsub.f32 0.0, %v1954_v12 }
 0x242   :  { %v1978_v14 = vmul.f32 1.442695, %v1965_v13 }
 0x244   :  { %2662 = vpow2.f32 %v1978_v14 }
 0x24e   :  { %v2663_v15 = vpop.eup %2662 }
 0x24f   :  { %v1986_v16 = vadd.f32 1.0, %v2663_v15 }
 0x251   :  { %2664 = vrcp.f32 %v1986_v16 }
 0x25b   :  { %v2665_v21 = vpop.eup %2664 }
 0x25c   :  { %2001 = vst.msk [vmem:[#allocation2 + $0x30] sm:$0xff] %vm2000_vm2, %v2665_v21 }
 0x279   :  { %v1872_v26 = vpop.f32.mrb[4].mxu0 }
 0x27a   :  { %v2300_v27 = vadd.f32 %v1872_v26, %v465_v24  ;;  %v1874_v29 = vpop.f32.mrb[5].mxu0 }
 0x27b   :  { %v2301_v33 = vadd.f32 %v1874_v29, %v469_v25  ;;  %v1876_v34 = vpop.f32.mrb[6].mxu0 }
 0x27c   :  { %v1963_v35 = vsub.f32 0.0, %v2300_v27  ;;  %v1877_v53 = vpop.f32.mrb[7].mxu0 }
 0x27d   :  { %v1964_v37 = vsub.f32 0.0, %v2301_v33 }
 0x27e   :  { %v1974_v38 = vmul.f32 1.442695, %v1963_v35 }
 0x27f   :  { %v1976_v40 = vmul.f32 1.442695, %v1964_v37 }
 0x280   :  { %2666 = vpow2.f32 %v1974_v38 }
 0x281   :  { %2668 = vpow2.f32 %v1976_v40 }
 0x28a   :  { %v2667_v41 = vpop.eup %2666 }
 0x28b   :  { %v2669_v42 = vpop.eup %2668  ;;  %v1984_v19 = vadd.f32 1.0, %v2667_v41 }
 0x28c   :  { %v1985_v17 = vadd.f32 1.0, %v2669_v42 }
 0x28d   :  { %2670 = vrcp.f32 %v1984_v19 }
 0x28e   :  { %2672 = vrcp.f32 %v1985_v17 }
 0x297   :  { %v2671_v30 = vpop.eup %2670 }
 0x298   :  { %v2673_v43 = vpop.eup %2672  ;;  %1998 = vst [vmem:[#allocation2 + $0x20] sm:$0xff] %v2671_v30 }
 0x299   :  { %1999 = vst [vmem:[#allocation2 + $0x28] sm:$0xff] %v2673_v43 }
 0x29a   :  { %2685 = shalt.err (!%p2682_p4)
}
 0x29b   :  { %s2686_s16 = scalar_lea.hbm %s3519_s5, 896 }
 0x29c   :  { %p2687_p5 = scmp.ne.s32.totalorder %s3519_s5, %s2686_s16  ;;  %p2690_p6 = scmp.lt.u32.totalorder %s2686_s16, %s3519_s5 }
 0x29e   :  { %p2692_p7 = pnand %p2690_p6, %p2687_p5 }
 0x2a0   :  { %2695 = shalt.err (!%p2692_p7)
}
 0x2a1   :  { %2011 = dma.vmem_to_hbm [thread:$0]  %s2009_s4, 896, %s3519_s5, [#allocation3]  }
 0x2a2   :  { %2696 = dma.done.wait [#allocation3], 896  }
 0x2a3   :  { %2697 = vsyncadd [#allocation3], 4294966400 }
 0x2a4   :  { %2015 = vsyncpa [#allocation3], 1 }

</bundles_post_ra>
